<compile_context>
chip_gen: v7x
topology: tpu7x:2x2x1
jax: 0.10.0
libtpu: 0.0.40
codegen_flags: <defaults>
</compile_context>

<pallas_src>
import functools
from math import sqrt

import jax
import jax.numpy as jnp
from jax import lax
from jax.experimental import pallas as pl
from jax.experimental.pallas import tpu as pltpu  # noqa: F401  (TPU backend)


def _mlp_fused_kernel(*refs, num_layers: int):
    """refs = (x_ref, w0, b0, w1, b1, ..., o_ref). All full-array VMEM blocks."""
    x_ref = refs[0]
    o_ref = refs[-1]
    p = refs[1:-1]

    h = x_ref[...]  # (B, n_in) f32 — stays resident for the whole forward pass
    for i in range(num_layers):
        w = p[2 * i][...]        # (n_in_i, n_out_i) bf16
        b = p[2 * i + 1][...]    # (1, n_out_i) f32, broadcasts over batch rows
        # bf16 x bf16 MXU pass, f32 accumulation.
        acc = jnp.dot(h.astype(jnp.bfloat16), w,
                      preferred_element_type=jnp.float32) + b
        if i < num_layers - 1:
            acc = jnp.maximum(acc, 0.0)   # ReLU between hidden layers
        h = acc
    o_ref[...] = h.astype(o_ref.dtype)    # true-shape store (masked vst is negligible here)


def mlp_forward_pallas(x, params):
    """x: (B, n_in) f32. params: [(w_t bf16 (n_in,n_out), b f32 (1,n_out)), ...]."""
    B, _ = x.shape
    num_layers = len(params)
    out_features = params[-1][0].shape[1]

    flat_params = []
    in_specs = [pl.BlockSpec(x.shape, lambda: (0, 0))]
    for w_t, b in params:
        flat_params.extend((w_t, b))
        in_specs.append(pl.BlockSpec(w_t.shape, lambda: (0, 0)))
        in_specs.append(pl.BlockSpec(b.shape, lambda: (0, 0)))

    # CostEstimate from TRUE (unpadded) sizes — advisory only.
    flops = sum(2 * B * w.shape[0] * w.shape[1] for w, _ in params)
    bytes_accessed = (
        x.size * x.dtype.itemsize
        + sum(w.size * w.dtype.itemsize + b.size * b.dtype.itemsize for w, b in params)
        + B * out_features * x.dtype.itemsize
    )

    kernel = functools.partial(_mlp_fused_kernel, num_layers=num_layers)
    # TODO(synk): when batch scales up, add a batch grid axis (M tile ~256 on
    # v6e/v7x, 128 on v5e) with dimension_semantics=("parallel",) so both v7x
    # TensorCores get work; at batch 8 a grid would only add per-step overhead.
    # TODO(synk): if this MLP is invoked repeatedly inside a larger jitted step,
    # batch the calls (or hoist the loop into a grid axis) to amortize dispatch.
    return pl.pallas_call(
        kernel,
        out_shape=jax.ShapeDtypeStruct((B, out_features), x.dtype),
        in_specs=in_specs,
        out_specs=pl.BlockSpec((B, out_features), lambda: (0, 0)),
        grid=(),
        cost_estimate=pl.CostEstimate(
            flops=flops, transcendentals=0, bytes_accessed=bytes_accessed
        ),
    )(x, *flat_params)


class NeuralNetworkPallas:
    """JAX/Pallas port of the PyTorch NeuralNetwork module (fused forward)."""

    def __init__(self, layers, key):
        assert len(layers) >= 2, "At least two layers are required"
        self.layers = layers
        self.params = []  # (w_t bf16 (n_in, n_out), b f32 (1, n_out))
        for i in range(len(layers) - 1):
            n_in, n_out = layers[i], layers[i + 1]
            a = 1 if i == 0 else 2
            key, wkey = jax.random.split(key)
            # torch.randn((n_out, n_in)) * sqrt(a/n_in); store transposed (n_in, n_out).
            w = jax.random.normal(wkey, (n_out, n_in), dtype=jnp.float32) * sqrt(a / n_in)
            # bf16 weights: half the DMA bytes, single-pass MXU; accumulation stays f32.
            w_t = jnp.transpose(w).astype(jnp.bfloat16)
            b = jnp.zeros((1, n_out), dtype=jnp.float32)
            self.params.append((w_t, b))

    def __call__(self, x):
        return mlp_forward_pallas(x, self.params)


if __name__ == "__main__":
    key = jax.random.PRNGKey(0)
    key, xkey = jax.random.split(key)

    layers = [16, 32, 32, 4]  # input=16, two hidden of 32, output=4
    batch = 8
    x = jax.random.normal(xkey, (batch, layers[0]), dtype=jnp.float32)

    net = NeuralNetworkPallas(layers, key)
    out = net(x)
    jax.block_until_ready(out)

    # Pure-JAX reference mirroring the kernel's bf16-weight / f32-accumulate math.
    ref = x
    for i, (w_t, b) in enumerate(net.params):
        h_b = ref.astype(jnp.bfloat16).astype(jnp.float32)
        w_f = w_t.astype(jnp.float32)
        ref = jnp.dot(h_b, w_f, precision=lax.Precision.HIGHEST) + b
        if i < len(net.params) - 1:
            ref = jnp.maximum(ref, 0.0)

    assert out.shape == (batch, layers[-1])
    assert out.dtype == x.dtype
    assert jnp.allclose(out, ref, atol=1e-4, rtol=1e-4), float(
        jnp.max(jnp.abs(out - ref))
    )

    print("KERNEL_OK")
</pallas_src>

<mosaic_0001>
module attributes {stable_mosaic.version = 11 : i64} {
  func.func @_mlp_fused_kernel(%arg0: memref<8x16xf32, #tpu.memory_space<vmem>>, %arg1: memref<16x32xbf16, #tpu.memory_space<vmem>>, %arg2: memref<1x32xf32, #tpu.memory_space<vmem>>, %arg3: memref<32x32xbf16, #tpu.memory_space<vmem>>, %arg4: memref<1x32xf32, #tpu.memory_space<vmem>>, %arg5: memref<32x4xbf16, #tpu.memory_space<vmem>>, %arg6: memref<1x4xf32, #tpu.memory_space<vmem>>, %arg7: memref<8x4xf32, #tpu.memory_space<vmem>>) attributes {dimension_semantics = [], scalar_prefetch = 0 : i64, scratch_operands = 0 : i64, tpu.core_type = #tpu.core_type<tc>} {
    %c0 = arith.constant 0 : index
    %c0_0 = arith.constant 0 : index
    %0 = vector.load %arg0[%c0, %c0_0] : memref<8x16xf32, #tpu.memory_space<vmem>>, vector<8x16xf32>
    %c0_1 = arith.constant 0 : index
    %c0_2 = arith.constant 0 : index
    %1 = vector.load %arg1[%c0_1, %c0_2] : memref<16x32xbf16, #tpu.memory_space<vmem>>, vector<16x32xbf16>
    %c0_3 = arith.constant 0 : index
    %c0_4 = arith.constant 0 : index
    %2 = vector.load %arg2[%c0_3, %c0_4] : memref<1x32xf32, #tpu.memory_space<vmem>>, vector<1x32xf32>
    %3 = arith.truncf %0 : vector<8x16xf32> to vector<8x16xbf16>
    %cst = arith.constant dense<0.000000e+00> : vector<8x32xf32>
    %4 = tpu.matmul %3, %1, %cst {dimension_numbers = #tpu.dot_dimension_numbers<[1], [0], [0], [1], [0, 0, 1, 1], [], []>} : vector<8x16xbf16>, vector<16x32xbf16>, vector<8x32xf32> -> vector<8x32xf32>
    %5 = vector.broadcast %2 : vector<1x32xf32> to vector<8x32xf32>
    %6 = arith.addf %4, %5 : vector<8x32xf32>
    %cst_5 = arith.constant 0.000000e+00 : f32
    %7 = vector.broadcast %cst_5 : f32 to vector<8x32xf32>
    %8 = arith.maximumf %6, %7 : vector<8x32xf32>
    %c0_6 = arith.constant 0 : index
    %c0_7 = arith.constant 0 : index
    %9 = vector.load %arg3[%c0_6, %c0_7] : memref<32x32xbf16, #tpu.memory_space<vmem>>, vector<32x32xbf16>
    %c0_8 = arith.constant 0 : index
    %c0_9 = arith.constant 0 : index
    %10 = vector.load %arg4[%c0_8, %c0_9] : memref<1x32xf32, #tpu.memory_space<vmem>>, vector<1x32xf32>
    %11 = arith.truncf %8 : vector<8x32xf32> to vector<8x32xbf16>
    %cst_10 = arith.constant dense<0.000000e+00> : vector<8x32xf32>
    %12 = tpu.matmul %11, %9, %cst_10 {dimension_numbers = #tpu.dot_dimension_numbers<[1], [0], [0], [1], [0, 0, 1, 1], [], []>} : vector<8x32xbf16>, vector<32x32xbf16>, vector<8x32xf32> -> vector<8x32xf32>
    %13 = vector.broadcast %10 : vector<1x32xf32> to vector<8x32xf32>
    %14 = arith.addf %12, %13 : vector<8x32xf32>
    %cst_11 = arith.constant 0.000000e+00 : f32
    %15 = vector.broadcast %cst_11 : f32 to vector<8x32xf32>
    %16 = arith.maximumf %14, %15 : vector<8x32xf32>
    %c0_12 = arith.constant 0 : index
    %c0_13 = arith.constant 0 : index
    %17 = vector.load %arg5[%c0_12, %c0_13] : memref<32x4xbf16, #tpu.memory_space<vmem>>, vector<32x4xbf16>
    %c0_14 = arith.constant 0 : index
    %c0_15 = arith.constant 0 : index
    %18 = vector.load %arg6[%c0_14, %c0_15] : memref<1x4xf32, #tpu.memory_space<vmem>>, vector<1x4xf32>
    %19 = arith.truncf %16 : vector<8x32xf32> to vector<8x32xbf16>
    %cst_16 = arith.constant dense<0.000000e+00> : vector<8x4xf32>
    %20 = tpu.matmul %19, %17, %cst_16 {dimension_numbers = #tpu.dot_dimension_numbers<[1], [0], [0], [1], [0, 0, 1, 1], [], []>} : vector<8x32xbf16>, vector<32x4xbf16>, vector<8x4xf32> -> vector<8x4xf32>
    %21 = vector.broadcast %18 : vector<1x4xf32> to vector<8x4xf32>
    %22 = arith.addf %20, %21 : vector<8x4xf32>
    %c0_17 = arith.constant 0 : index
    %c0_18 = arith.constant 0 : index
    %23 = vector.load %arg7[%c0_17, %c0_18] : memref<8x4xf32, #tpu.memory_space<vmem>>, vector<8x4xf32>
    tpu.vector_store %arg7[%c0_17, %c0_18], %22 {strides = array<i32>} : memref<8x4xf32, #tpu.memory_space<vmem>>, vector<8x4xf32>,
    return
  }
}

</mosaic_0001>

<bundles_post_ra>
// kernel: tpu_custom_call.1
= control target key start
LH: loop header
LB: loop body
LE: loop exit
PB: predicated region body
PF: predicated region fallthrough
CT: control target
= control target key end

     0   :  { %12 = vsyncpa [#allocation3], 0  ;;  %s321_s24 = smov [#allocation2]   ;;  %s405_s0 = inlined_call_operand.vmem [shape: f32[8,16], index: 0, kind: input, shape index: {}]   ;;  %s406_s1 = inlined_call_operand.hbm [shape: bf16[16,32], index: 1, kind: input, shape index: {}]   ;;  %s407_s2 = inlined_call_operand.vmem [shape: f32[1,32], index: 2, kind: input, shape index: {}]   ;;  %s408_s3 = inlined_call_operand.vmem [shape: bf16[32,32], index: 3, kind: input, shape index: {}]   ;;  %s409_s4 = inlined_call_operand.vmem [shape: f32[1,32], index: 4, kind: input, shape index: {}]   ;;  %s410_s5 = inlined_call_operand.vmem [shape: bf16[32,4], index: 5, kind: input, shape index: {}]   ;;  %s411_s6 = inlined_call_operand.vmem [shape: f32[1,4], index: 6, kind: input, shape index: {}]   ;;  %s412_s7 = inlined_call_operand.vmem [shape: f32[8,4], index: 7, kind: output, shape index: {}]  }
   0x1   :  { %s20_s25 = sshll.u32 %s321_s24, 4  ;;  %s297_s28 = scalar_lea.hbm %s406_s1, 128  ;;  %s21_s25 = int_to_ptr.vmem [resolvable:$true] %s20_s25 }
   0x2   :  { %p298_p0 = scmp.ne.s32.totalorder %s406_s1, %s297_s28  ;;  %p301_p1 = scmp.lt.u32.totalorder %s297_s28, %s406_s1 }
   0x4   :  { %p303_p2 = pnand %p301_p1, %p298_p0 }
   0x6   :  { %306 = shalt.err (!%p303_p2)
}
   0x7   :  { %s307_s10 = scalar_lea.vmem %s21_s25, 128  ;;  %p312_p4 = scmp.lt.s32.totalorder %s21_s25, %s21_s25 }
   0x8   :  { %p308_p3 = scmp.ne.s32.totalorder %s21_s25, %s307_s10  ;;  %p313_p5 = scmp.lt.s32.totalorder %s307_s10, %s307_s10 }
   0xa   :  { %p314_p6 = por %p313_p5, %p312_p4 }
   0xc   :  { %p315_p7 = pnand %p314_p6, %p308_p3 }
   0xe   :  { %318 = shalt.err (!%p315_p7)
}
   0xf   :  { %s322_s11 = smov 64   ;;  %s323_s12 = smov 4  }
  0x10   :  { %26 = dma.hbm_to_vmem [thread:$0]  %s406_s1, 128, %s21_s25, [#allocation3], %s322_s11, %s322_s11, %s323_s12  }
  0x11   :  { %319 = dma.done.wait [#allocation3], 128  }
  0x12   :  { %320 = vsyncadd [#allocation3], 4294967168  ;;  %v324_v0 = vmov 0.0   ;;  %vm325_vm0 = vmmov 0   ;;  %v292_v1 = vld [vmem:[#allocation2] sm:$0xff]   ;;  %vm58_vm1 = vcmask 130048  }
  0x13   :  { %265 = vmatprep.subr.bf16.mxu0 %v324_v0  ;;  %267 = vmatprep.mubr.msk.bf16.mxu0 %vm325_vm0, %v324_v0  ;;  %v41_v2 = vld [vmem:[%s405_s0] sm:$0xff]  ;;  %v294_v5 = vld [vmem:[%s408_s3 + $0x8] sm:$0xff]   ;;  %vm127_vm2 = vcmask 261120   ;;  %vm239_vm3 = vcmask 31744  }
  0x14   :  { %271 = vmatprep.subr.bf16.mxu1 %v324_v0  ;;  %275 = vmatprep.mubr.msk.bf16.mxu1 %vm325_vm0, %v324_v0  ;;  %v45_v3 = vpack.c.bf16 %v41_v2, %v41_v2  ;;  %v293_v4 = vld [vmem:[%s408_s3] sm:$0xff]   ;;  %v296_v15 = vld [vmem:[%s410_s5 + $0x8] sm:$0xff]  }
  0x15   :  { %266 = vmatpush3.bf16.msra.mxu0 %v292_v1  ;;  %272 = vmatpush3.bf16.msra.mxu1 %v293_v4  ;;  %v295_v6 = vld [vmem:[%s410_s5] sm:$0xff]  }
  0x16   :  { %279 = vmatprep.subr.bf16.mxu0 %v324_v0  ;;  %273 = vmatprep.subr.bf16.mxu1 %v324_v0  ;;  %v246_v7 = vld [vmem:[%s407_s2] ss:$0 sm:$0xff] }
  0x17   :  { %v249_v16 = vld [vmem:[%s409_s4] ss:$0 sm:$0xff] }
  0x18   :  { %268 = vmatmul.mubr.msk.bf16.vlgmr.msra.gmra.mrb[0].mxu0 %vm58_vm1, %v45_v3  ;;  %v253_v24 = vld [vmem:[%s411_s6] ss:$0 sm:$0xff] }
  0x19   :  { %283 = vmatprep.mubr.msk.bf16.mxu0 %vm325_vm0, %v324_v0  ;;  %274 = vmatpush3.bf16.msra.mxu1 %v294_v5 }
  0x1a   :  { %280 = vmatpush3.bf16.msra.mxu0 %v295_v6 }
  0x1b   :  { %281 = vmatprep.subr.bf16.mxu0 %v324_v0 }
  0x1e   :  { %282 = vmatpush3.bf16.msra.mxu0 %v296_v15 }
  0xeb   :  { %v96_v8 = vpop.f32.mrb[0].mxu0 }
  0xec   :  { %v97_v9 = vadd.f32 %v246_v7, %v96_v8  ;;  %v269_v10 = vpop.f32.mrb[1].mxu0 }
  0xed   :  { %v99_v11 = vpop.f32.mrb[2].mxu0 }
  0xee   :  { %v102_v12 = vmax.f32 %v97_v9, 0.0  ;;  %v270_v13 = vpop.f32.mrb[3].mxu0 }
  0xf0   :  { %v108_v14 = vpack.c.bf16 %v102_v12, %v102_v12 }
  0xf2   :  { %276 = vmatmul.mubr.msk.bf16.vlgmr.msra.gmra.mrb[0].mxu1 %vm127_vm2, %v108_v14 }
 0x1c5   :  { %v165_v17 = vpop.f32.mrb[0].mxu1 }
 0x1c6   :  { %v166_v18 = vadd.f32 %v249_v16, %v165_v17  ;;  %v277_v19 = vpop.f32.mrb[1].mxu1 }
 0x1c7   :  { %v168_v20 = vpop.f32.mrb[2].mxu1 }
 0x1c8   :  { %v171_v21 = vmax.f32 %v166_v18, 0.0  ;;  %v278_v22 = vpop.f32.mrb[3].mxu1 }
 0x1ca   :  { %v177_v23 = vpack.c.bf16 %v171_v21, %v171_v21 }
 0x1cc   :  { %284 = vmatmul.mubr.msk.bf16.vlgmr.msra.gmra.mrb[4].mxu0 %vm127_vm2, %v177_v23 }
 0x29f   :  { %v233_v25 = vpop.f32.mrb[4].mxu0 }
 0x2a0   :  { %v234_v26 = vadd.f32 %v253_v24, %v233_v25  ;;  %v285_v27 = vpop.f32.mrb[5].mxu0 }
 0x2a1   :  { %v236_v28 = vpop.f32.mrb[6].mxu0 }
 0x2a2   :  { %240 = vst.msk [vmem:[%s412_s7] sm:$0xff] %vm239_vm3, %v234_v26  ;;  %v286_v29 = vpop.f32.mrb[7].mxu0 }
 0x2a3   :  { %245 = vsyncpa [#allocation3], 1 }

</bundles_post_ra>
